<compile_context>
chip_gen: v5e
topology: v5e:2x2
jax: 0.10.0
libtpu: 0.0.40
codegen_flags: <defaults>
</compile_context>

<pallas_src>
import functools

import jax
import jax.numpy as jnp
from jax.experimental import pallas as pl
from jax.experimental.pallas import tpu as pltpu


# ---------------------------------------------------------------------------
# Fused Pallas kernel: conv1 -> relu -> dropout -> conv2, channel-major.
# ---------------------------------------------------------------------------
def _fused_cheb_encoder_kernel(*refs, with_dropout):
    if with_dropout:
        (xt_ref, lhat_t_ref, w1c_ref, b1t_ref, w2c_ref, b2t_ref,
         mask_ref, out_ref) = refs
    else:
        (xt_ref, lhat_t_ref, w1c_ref, b1t_ref, w2c_ref, b2t_ref,
         out_ref) = refs
        mask_ref = None

    compute_dtype = xt_ref.dtype            # f32 or bf16 (chosen by wrapper)

    xt = xt_ref[...]                         # [E, N]  channel-major features
    lh = lhat_t_ref[...]                     # [N, N]  L_hat^T

    # ---- conv1:  out^T = [W0^T | W1^T] @ [X^T ; X^T L^T] + b1^T -----------
    t1 = jnp.dot(xt, lh, preferred_element_type=jnp.float32)        # [E, N]
    basis1 = jnp.concatenate([xt, t1.astype(compute_dtype)], axis=0)  # [2E, N]
    h = jnp.dot(w1c_ref[...], basis1, preferred_element_type=jnp.float32)  # [H, N]
    h = jnp.maximum(h + b1t_ref[...], 0.0)                           # bias + relu (f32)

    # ---- dropout (inverted; mask precomputed in wrapper) -------------------
    if mask_ref is not None:
        h = h * mask_ref[...]

    # ---- conv2 --------------------------------------------------------------
    hc = h.astype(compute_dtype)
    t2 = jnp.dot(hc, lh, preferred_element_type=jnp.float32)         # [H, N]
    basis2 = jnp.concatenate([hc, t2.astype(compute_dtype)], axis=0)  # [2H, N]
    out = jnp.dot(w2c_ref[...], basis2, preferred_element_type=jnp.float32)  # [H, N]
    out_ref[...] = (out + b2t_ref[...]).astype(out_ref.dtype)


def cheb_encoder_forward(packed, lhat_t, *, dropout_p, training, rng_key=None,
                         mxu_dtype=jnp.float32):
    """Fused ChebEncoder forward. Returns node-major [n_nodes, n_hidden] f32."""
    xt = packed["xt"].astype(mxu_dtype)       # [E, N]
    lh = lhat_t.astype(mxu_dtype)             # [N, N]
    w1c = packed["w1c"].astype(mxu_dtype)     # [H, 2E]
    w2c = packed["w2c"].astype(mxu_dtype)     # [H, 2H]
    b1t = packed["b1t"].astype(jnp.float32)   # [H, 1]
    b2t = packed["b2t"].astype(jnp.float32)   # [H, 1]

    n_embed, n_nodes = xt.shape
    n_hidden = w1c.shape[0]

    use_dropout = bool(training) and float(dropout_p) > 0.0
    args = [xt, lh, w1c, b1t, w2c, b2t]
    if use_dropout:
        # TODO(synk): RNG stream differs from torch.nn.functional.dropout;
        # distributional semantics (inverted dropout, keep prob 1-p) match.
        keep = jax.random.bernoulli(rng_key, 1.0 - dropout_p, (n_hidden, n_nodes))
        args.append(keep.astype(jnp.float32) * (1.0 / (1.0 - dropout_p)))

    flops = (2 * n_embed * n_nodes * n_nodes            # X^T @ L^T
             + 2 * n_hidden * (2 * n_embed) * n_nodes   # W1c @ basis1
             + 2 * n_hidden * n_nodes * n_nodes         # H^T @ L^T
             + 2 * n_hidden * (2 * n_hidden) * n_nodes)  # W2c @ basis2
    bytes_accessed = (sum(a.size * a.dtype.itemsize for a in args)
                      + n_hidden * n_nodes * 4)

    kern = functools.partial(_fused_cheb_encoder_kernel, with_dropout=use_dropout)
    out_t = pl.pallas_call(
        kern,
        out_shape=jax.ShapeDtypeStruct((n_hidden, n_nodes), jnp.float32),
        compiler_params=pltpu.CompilerParams(vmem_limit_bytes=4 * 1024 * 1024),
        cost_estimate=pl.CostEstimate(flops=flops, transcendentals=0,
                                      bytes_accessed=bytes_accessed),
    )(*args)
    return out_t.T                                  # back to node-major [N, H]


# ---------------------------------------------------------------------------
# Plain-JAX glue: graph normalization + parameter construction / packing
# (hoisted out of the forward; the graph and weights are static per model).
# ---------------------------------------------------------------------------
def build_scaled_laplacian(edge_index, n_nodes):
    """Dense L_hat = 2/lambda_max * (I - D^-1/2 A D^-1/2) - I  with lambda_max=2."""
    row, col = edge_index[0], edge_index[1]
    a = jnp.zeros((n_nodes, n_nodes), jnp.float32).at[row, col].set(1.0)
    deg = a.sum(axis=1)
    dinv = jnp.where(deg > 0, 1.0 / jnp.sqrt(jnp.where(deg > 0, deg, 1.0)), 0.0)
    return -(dinv[:, None] * a * dinv[None, :])


def glorot(key, shape):
    fan_in, fan_out = shape
    limit = (6.0 / (fan_in + fan_out)) ** 0.5
    return jax.random.uniform(key, shape, jnp.float32, -limit, limit)


def init_params(key, n_nodes, n_embed, n_hidden):
    ks = jax.random.split(key, 7)
    return {
        "embedding": jax.random.normal(ks[0], (n_nodes, n_embed), jnp.float32),
        "conv1_w0": glorot(ks[1], (n_embed, n_hidden)),
        "conv1_w1": glorot(ks[2], (n_embed, n_hidden)),
        "conv1_b": jax.random.normal(ks[3], (1, n_hidden), jnp.float32) * 0.1,
        "conv2_w0": glorot(ks[4], (n_hidden, n_hidden)),
        "conv2_w1": glorot(ks[5], (n_hidden, n_hidden)),
        "conv2_b": jax.random.normal(ks[6], (1, n_hidden), jnp.float32) * 0.1,
    }


def pack_params(params):
    """Channel-major / stacked-K=2 parameter layout for the fused kernel."""
    return {
        "xt": params["embedding"].T,                                           # [E, N]
        "w1c": jnp.concatenate([params["conv1_w0"].T, params["conv1_w1"].T], 1),  # [H, 2E]
        "b1t": params["conv1_b"].T,                                            # [H, 1]
        "w2c": jnp.concatenate([params["conv2_w0"].T, params["conv2_w1"].T], 1),  # [H, 2H]
        "b2t": params["conv2_b"].T,                                            # [H, 1]
    }


def reference_no_dropout(params, lhat):
    x = params["embedding"]
    x = x @ params["conv1_w0"] + (lhat @ x) @ params["conv1_w1"] + params["conv1_b"]
    x = jnp.maximum(x, 0.0)
    x = x @ params["conv2_w0"] + (lhat @ x) @ params["conv2_w1"] + params["conv2_b"]
    return x


if __name__ == "__main__":
    N_NODES, N_EMBED, N_HIDDEN = 128, 32, 64

    # Deterministic graph: ring edges + chord edges, both directions (no dups,
    # no self loops) -> prop_edge_index of shape [2, 512].
    i = jnp.arange(N_NODES, dtype=jnp.int32)
    src = jnp.concatenate([i, (i + 1) % N_NODES, i, (i + 5) % N_NODES])
    dst = jnp.concatenate([(i + 1) % N_NODES, i, (i + 5) % N_NODES, i])
    prop_edge_index = jnp.stack([src, dst])

    params = init_params(jax.random.PRNGKey(0), N_NODES, N_EMBED, N_HIDDEN)
    packed = pack_params(params)

    # Graph normalization hoisted out of the forward (edge_index is static).
    lhat = build_scaled_laplacian(prop_edge_index, N_NODES)
    lhat_t = lhat.T   # general (directed) form; equals lhat for this symmetric graph

    ref = reference_no_dropout(params, lhat)

    # Eval mode, f32 MXU inputs: check against plain-JAX reference.
    out_f32 = cheb_encoder_forward(packed, lhat_t, dropout_p=0.5, training=False,
                                   mxu_dtype=jnp.float32)
    out_f32 = jax.block_until_ready(out_f32)
    assert out_f32.shape == (N_NODES, N_HIDDEN)
    assert jnp.allclose(out_f32, ref, atol=1e-2, rtol=1e-2)

    # Eval mode, bf16 MXU inputs (v5e/v6e/v7x fast path), f32 accumulation.
    out_bf16 = cheb_encoder_forward(packed, lhat_t, dropout_p=0.5, training=False,
                                    mxu_dtype=jnp.bfloat16)
    out_bf16 = jax.block_until_ready(out_bf16)
    assert jnp.allclose(out_bf16, ref, atol=5e-2, rtol=5e-2)

    # Training mode (exercises the in-kernel dropout-mask multiply path).
    out_train = cheb_encoder_forward(packed, lhat_t, dropout_p=0.5, training=True,
                                     rng_key=jax.random.PRNGKey(42),
                                     mxu_dtype=jnp.bfloat16)
    out_train = jax.block_until_ready(out_train)
    assert out_train.shape == (N_NODES, N_HIDDEN)

    print("KERNEL_OK")
</pallas_src>

<mosaic_0001>
module attributes {stable_mosaic.version = 11 : i64} {
  func.func @_fused_cheb_encoder_kernel(%arg0: memref<32x128xf32, #tpu.memory_space<vmem>>, %arg1: memref<128x128xf32, #tpu.memory_space<vmem>>, %arg2: memref<64x64xf32, #tpu.memory_space<vmem>>, %arg3: memref<64x1xf32, #tpu.memory_space<vmem>>, %arg4: memref<64x128xf32, #tpu.memory_space<vmem>>, %arg5: memref<64x1xf32, #tpu.memory_space<vmem>>, %arg6: memref<64x128xf32, #tpu.memory_space<vmem>>) attributes {dimension_semantics = [], scalar_prefetch = 0 : i64, scratch_operands = 0 : i64, tpu.core_type = #tpu.core_type<tc>} {
    %c0 = arith.constant 0 : index
    %c0_0 = arith.constant 0 : index
    %0 = vector.load %arg0[%c0, %c0_0] : memref<32x128xf32, #tpu.memory_space<vmem>>, vector<32x128xf32>
    %c0_1 = arith.constant 0 : index
    %c0_2 = arith.constant 0 : index
    %1 = vector.load %arg1[%c0_1, %c0_2] : memref<128x128xf32, #tpu.memory_space<vmem>>, vector<128x128xf32>
    %cst = arith.constant dense<0.000000e+00> : vector<32x128xf32>
    %2 = tpu.matmul %0, %1, %cst {dimension_numbers = #tpu.dot_dimension_numbers<[1], [0], [0], [1], [0, 0, 1, 1], [], []>} : vector<32x128xf32>, vector<128x128xf32>, vector<32x128xf32> -> vector<32x128xf32>
    %3 = tpu.concatenate %0, %2 in 0 : vector<32x128xf32>, vector<32x128xf32> -> vector<64x128xf32>
    %c0_3 = arith.constant 0 : index
    %c0_4 = arith.constant 0 : index
    %4 = vector.load %arg2[%c0_3, %c0_4] : memref<64x64xf32, #tpu.memory_space<vmem>>, vector<64x64xf32>
    %cst_5 = arith.constant dense<0.000000e+00> : vector<64x128xf32>
    %5 = tpu.matmul %4, %3, %cst_5 {dimension_numbers = #tpu.dot_dimension_numbers<[1], [0], [0], [1], [0, 0, 1, 1], [], []>} : vector<64x64xf32>, vector<64x128xf32>, vector<64x128xf32> -> vector<64x128xf32>
    %c0_6 = arith.constant 0 : index
    %c0_7 = arith.constant 0 : index
    %6 = vector.load %arg3[%c0_6, %c0_7] : memref<64x1xf32, #tpu.memory_space<vmem>>, vector<64x1xf32>
    %7 = vector.broadcast %6 : vector<64x1xf32> to vector<64x128xf32>
    %8 = arith.addf %5, %7 : vector<64x128xf32>
    %cst_8 = arith.constant 0.000000e+00 : f32
    %9 = vector.broadcast %cst_8 : f32 to vector<64x128xf32>
    %10 = arith.maximumf %8, %9 : vector<64x128xf32>
    %cst_9 = arith.constant dense<0.000000e+00> : vector<64x128xf32>
    %11 = tpu.matmul %10, %1, %cst_9 {dimension_numbers = #tpu.dot_dimension_numbers<[1], [0], [0], [1], [0, 0, 1, 1], [], []>} : vector<64x128xf32>, vector<128x128xf32>, vector<64x128xf32> -> vector<64x128xf32>
    %12 = tpu.concatenate %10, %11 in 0 : vector<64x128xf32>, vector<64x128xf32> -> vector<128x128xf32>
    %c0_10 = arith.constant 0 : index
    %c0_11 = arith.constant 0 : index
    %13 = vector.load %arg4[%c0_10, %c0_11] : memref<64x128xf32, #tpu.memory_space<vmem>>, vector<64x128xf32>
    %cst_12 = arith.constant dense<0.000000e+00> : vector<64x128xf32>
    %14 = tpu.matmul %13, %12, %cst_12 {dimension_numbers = #tpu.dot_dimension_numbers<[1], [0], [0], [1], [0, 0, 1, 1], [], []>} : vector<64x128xf32>, vector<128x128xf32>, vector<64x128xf32> -> vector<64x128xf32>
    %c0_13 = arith.constant 0 : index
    %c0_14 = arith.constant 0 : index
    %15 = vector.load %arg5[%c0_13, %c0_14] : memref<64x1xf32, #tpu.memory_space<vmem>>, vector<64x1xf32>
    %16 = vector.broadcast %15 : vector<64x1xf32> to vector<64x128xf32>
    %17 = arith.addf %14, %16 : vector<64x128xf32>
    %c0_15 = arith.constant 0 : index
    %c0_16 = arith.constant 0 : index
    %18 = vector.load %arg6[%c0_15, %c0_16] : memref<64x128xf32, #tpu.memory_space<vmem>>, vector<64x128xf32>
    tpu.vector_store %arg6[%c0_15, %c0_16], %17 {strides = array<i32>} : memref<64x128xf32, #tpu.memory_space<vmem>>, vector<64x128xf32>,
    return
  }
}

</mosaic_0001>

<bundles_post_ra>
// kernel: tpu_custom_call.1
= control target key start
LH: loop header
LB: loop body
LE: loop exit
PB: predicated region body
PF: predicated region fallthrough
CT: control target
= control target key end

     0   :  { %11 = vsyncpa [#allocation3], 0  ;;  %s726_s0 = inlined_call_operand.hbm [shape: f32[32,128], index: 0, kind: input, shape index: {}]   ;;  %s727_s1 = inlined_call_operand.vmem [shape: f32[128,128], index: 1, kind: input, shape index: {}]   ;;  %s728_s2 = inlined_call_operand.hbm [shape: f32[64,64], index: 2, kind: input, shape index: {}]   ;;  %s729_s3 = inlined_call_operand.vmem [shape: f32[64,1], index: 3, kind: input, shape index: {}]   ;;  %s730_s4 = inlined_call_operand.hbm [shape: f32[64,128], index: 4, kind: input, shape index: {}]   ;;  %s731_s5 = inlined_call_operand.vmem [shape: f32[64,1], index: 5, kind: input, shape index: {}]   ;;  %s732_s6 = inlined_call_operand.hbm [shape: f32[64,128], index: 6, kind: output, shape index: {}]  }
   0x1   :  { %12 = vsyncpa [#allocation6], 0 }
   0x2   :  { %13 = vsyncpa [#allocation4], 0  ;;  %s33_s23 = sshll.u32 %s728_s2, 4  ;;  %s552_s24 = smov [#allocation5]   ;;  %s34_s23 = int_to_ptr.hbm [resolvable:$true] %s33_s23 }
   0x3   :  { %s35_s25 = sshll.u32 %s552_s24, 4  ;;  %s18_s28 = sshll.u32 %s726_s0, 4  ;;  %s36_s25 = int_to_ptr.vmem [resolvable:$true] %s35_s25  ;;  %s19_s28 = int_to_ptr.hbm [resolvable:$true] %s18_s28 }
   0x4   :  { %s553_s29 = smov 128   ;;  %s554_s30 = smov 8  }
   0x5   :  { %41 = dma.hbm_to_vmem [thread:$0]  %s34_s23, 1024, %s36_s25, [#allocation6], %s553_s29, %s553_s29, %s554_s30  }
   0x6   :  { %s555_s7 = smov [#allocation2]   ;;  %s48_s2 = sshll.u32 %s730_s4, 4  ;;  %s49_s2 = int_to_ptr.hbm [resolvable:$true] %s48_s2 }
   0x7   :  { %s20_s8 = sshll.u32 %s555_s7, 4  ;;  %s556_s0 = smov [#allocation7]   ;;  %s21_s8 = int_to_ptr.vmem [resolvable:$true] %s20_s8 }
   0x8   :  { %26 = dma.hbm_to_vmem [thread:$0]  %s19_s28, 512, %s21_s8, [#allocation3], %s553_s29, %s553_s29, %s554_s30  }
   0x9   :  { %s50_s11 = sshll.u32 %s556_s0, 4  ;;  %s51_s11 = int_to_ptr.vmem [resolvable:$true] %s50_s11 }
   0xa   :  { %56 = dma.hbm_to_vmem [thread:$0]  %s49_s2, 1024, %s51_s11, [#allocation6], %s553_s29, %s553_s29, %s554_s30  }
   0xb   :  { %546 = dma.done.wait [#allocation3], 512  }
   0xc   :  { %547 = vsyncadd [#allocation3], 4294966784 }
   0xd   :  { %548 = dma.done.wait [#allocation6], 2048  }
   0xe   :  { %549 = vsyncadd [#allocation6], 4294965248  ;;  %v90_v0 = vld [vmem:[%s727_s1 + $0x78] sm:$0xff]  ;;  %v89_v1 = vld [vmem:[%s727_s1 + $0x70] sm:$0xff]  ;;  %v557_v21 = vmov 0   ;;  %vm176_vm0 = vcmask 523264  }
   0xf   :  { %91 = vmatpush.msra.mxu0 %v90_v0  ;;  %424 = vmatpush.msra.mxu2 %v90_v0  ;;  %v88_v2 = vld [vmem:[%s727_s1 + $0x68] sm:$0xff]  ;;  %v87_v3 = vld [vmem:[%s727_s1 + $0x60] sm:$0xff]  ;;  %v86_v4 = vld [vmem:[%s727_s1 + $0x58] sm:$0xff]  ;;  %s402_s25 = sshll.u32 %s732_s6, 4  ;;  %s403_s25 = int_to_ptr.hbm [resolvable:$true] %s402_s25 }
  0x10   :  { %v85_v5 = vld [vmem:[%s727_s1 + $0x50] sm:$0xff]  ;;  %v84_v6 = vld [vmem:[%s727_s1 + $0x48] sm:$0xff]  ;;  %v83_v7 = vld [vmem:[%s727_s1 + $0x40] sm:$0xff]  ;;  %447 = vset.pattern.permute.xlu0 %v557_v21  ;;  %448 = vset.pattern.permute.xlu1 %v557_v21 }
  0x11   :  { %92 = vmatpush.msra.mxu0 %v89_v1  ;;  %425 = vmatpush.msra.mxu2 %v89_v1  ;;  %v82_v8 = vld [vmem:[%s727_s1 + $0x38] sm:$0xff]  ;;  %v81_v9 = vld [vmem:[%s727_s1 + $0x30] sm:$0xff]  ;;  %v80_v10 = vld [vmem:[%s727_s1 + $0x28] sm:$0xff] }
  0x12   :  { %v79_v11 = vld [vmem:[%s727_s1 + $0x20] sm:$0xff]  ;;  %v78_v12 = vld [vmem:[%s727_s1 + $0x18] sm:$0xff]  ;;  %v77_v13 = vld [vmem:[%s727_s1 + $0x10] sm:$0xff]  ;;  %449 = vset.pattern.permute.xlu2 %v557_v21 }
  0x13   :  { %93 = vmatpush.msra.mxu0 %v88_v2  ;;  %426 = vmatpush.msra.mxu2 %v88_v2  ;;  %v76_v14 = vld [vmem:[%s727_s1 + $0x8] sm:$0xff]  ;;  %v75_v15 = vld [vmem:[%s727_s1] sm:$0xff]  ;;  %v73_v18 = vld [vmem:[#allocation2 + $0x10] sm:$0xff] }
  0x14   :  { %v660_v16 = vld [vmem:[#allocation2] sm:$0xff]  ;;  %v72_v17 = vld [vmem:[#allocation2 + $0x8] sm:$0xff]  ;;  %v74_v19 = vld [vmem:[#allocation2 + $0x18] sm:$0xff] }
  0x15   :  { %94 = vmatpush.msra.mxu0 %v87_v3  ;;  %427 = vmatpush.msra.mxu2 %v87_v3  ;;  %v129_v20 = vld [vmem:[%s729_s3 + $0x8] sm:$0xff]  ;;  %v130_v22 = vld [vmem:[%s729_s3 + $0x10] sm:$0xff]  ;;  %v131_v24 = vld [vmem:[%s729_s3 + $0x18] sm:$0xff] }
  0x16   :  { %143 = vperm.xlu0 %447, %v129_v20   ;;  %v135_v25 = vld [vmem:[%s729_s3 + $0x38] sm:$0xff]  ;;  %153 = vperm.xlu1 %448, %v131_v24   ;;  %v132_v27 = vld [vmem:[%s729_s3 + $0x20] sm:$0xff]  ;;  %v300_v28 = vld [vmem:[%s731_s5 + $0x8] sm:$0xff] }
  0x17   :  { %95 = vmatpush.msra.mxu0 %v86_v4  ;;  %428 = vmatpush.msra.mxu2 %v86_v4  ;;  %v303_v30 = vld [vmem:[%s731_s5 + $0x20] sm:$0xff]  ;;  %v306_v33 = vld [vmem:[%s731_s5 + $0x38] sm:$0xff]  ;;  %v301_v34 = vld [vmem:[%s731_s5 + $0x10] sm:$0xff] }
  0x18   :  { %v128_v31 = vld [vmem:[%s729_s3] sm:$0xff]  ;;  %v304_v36 = vld [vmem:[%s731_s5 + $0x28] sm:$0xff]  ;;  %v122_v39 = vld [vmem:[#allocation5 + $0x10] sm:$0xff] }
  0x19   :  { %96 = vmatpush.msra.mxu0 %v85_v5  ;;  %429 = vmatpush.msra.mxu2 %v85_v5  ;;  %v120_v35 = vld [vmem:[#allocation5] sm:$0xff]  ;;  %v121_v37 = vld [vmem:[#allocation5 + $0x8] sm:$0xff]  ;;  %v134_v40 = vld [vmem:[%s729_s3 + $0x30] sm:$0xff] }
  0x1a   :  { %v133_v38 = vld [vmem:[%s729_s3 + $0x28] sm:$0xff]  ;;  %v123_v41 = vld [vmem:[#allocation5 + $0x18] sm:$0xff]  ;;  %v299_v42 = vld [vmem:[%s731_s5] sm:$0xff] }
  0x1b   :  { %97 = vmatpush.msra.mxu0 %v84_v6  ;;  %430 = vmatpush.msra.mxu2 %v84_v6  ;;  %v124_v43 = vld [vmem:[#allocation5 + $0x20] sm:$0xff]  ;;  %v302_v44 = vld [vmem:[%s731_s5 + $0x18] sm:$0xff]  ;;  %v125_v45 = vld [vmem:[#allocation5 + $0x28] sm:$0xff] }
  0x1c   :  { %163 = vperm.xlu2 %449, %v133_v38   ;;  %v305_v46 = vld [vmem:[%s731_s5 + $0x30] sm:$0xff]  ;;  %v127_v48 = vld [vmem:[#allocation5 + $0x38] sm:$0xff]  ;;  %s558_s5 = smov [#allocation8]  }
  0x1d   :  { %98 = vmatpush.msra.mxu0 %v83_v7  ;;  %431 = vmatpush.msra.mxu2 %v83_v7  ;;  %v126_v47 = vld [vmem:[#allocation5 + $0x30] sm:$0xff]  ;;  %s400_s22 = sshll.u32 %s558_s5, 4  ;;  %s401_s22 = int_to_ptr.vmem [resolvable:$true] %s400_s22 }
  0x1e   :  { %148 = vperm.xlu0 %447, %v130_v22   ;;  %158 = vperm.xlu1 %448, %v132_v27   ;;  %v293_v27 = vld [vmem:[#allocation7 + $0x10] sm:$0xff] }
  0x1f   :  { %99 = vmatpush.msra.mxu0 %v82_v8  ;;  %432 = vmatpush.msra.mxu2 %v82_v8 }
  0x21   :  { %100 = vmatpush.msra.mxu0 %v81_v9  ;;  %433 = vmatpush.msra.mxu2 %v81_v9 }
  0x23   :  { %101 = vmatpush.msra.mxu0 %v80_v10  ;;  %434 = vmatpush.msra.mxu2 %v80_v10 }
  0x24   :  { %168 = vperm.xlu2 %449, %v134_v40  }
  0x25   :  { %102 = vmatpush.msra.mxu0 %v79_v11  ;;  %435 = vmatpush.msra.mxu2 %v79_v11 }
  0x26   :  { %173 = vperm.xlu0 %447, %v135_v25   ;;  %138 = vperm.xlu1 %448, %v128_v31   ;;  %v291_v25 = vld [vmem:[#allocation7] sm:$0xff]  ;;  %v297_v31 = vld [vmem:[#allocation7 + $0x30] sm:$0xff] }
  0x27   :  { %103 = vmatpush.msra.mxu0 %v78_v12  ;;  %436 = vmatpush.msra.mxu2 %v78_v12 }
  0x29   :  { %104 = vmatpush.msra.mxu0 %v77_v13  ;;  %437 = vmatpush.msra.mxu2 %v77_v13 }
  0x2b   :  { %105 = vmatpush.msra.mxu0 %v76_v14  ;;  %438 = vmatpush.msra.mxu2 %v76_v14 }
  0x2c   :  { %309 = vperm.xlu2 %449, %v299_v42  }
  0x2d   :  { %106 = vmatpush.msra.mxu0 %v75_v15  ;;  %439 = vmatpush.msra.mxu2 %v75_v15 }
  0x2e   :  { %107 = vmatmul.f32.vlgmr.msra.gmra.mxu0 %v660_v16  ;;  %314 = vperm.xlu0 %447, %v300_v28   ;;  %v294_v28 = vld [vmem:[#allocation7 + $0x18] sm:$0xff] }
  0x2f   :  { %250 = vmatpush.msrb.mxu0 %v90_v0  ;;  %319 = vperm.xlu1 %448, %v301_v34  }
  0x31   :  { %251 = vmatpush.msrb.mxu0 %v89_v1 }
  0x33   :  { %252 = vmatpush.msrb.mxu0 %v88_v2 }
  0x34   :  { %324 = vperm.xlu2 %449, %v302_v44  }
  0x35   :  { %253 = vmatpush.msrb.mxu0 %v87_v3 }
  0x36   :  { %110 = vmatmul.f32.gmra.mxu0 %v72_v17  ;;  %329 = vperm.xlu0 %447, %v303_v30   ;;  %v296_v30 = vld [vmem:[#allocation7 + $0x28] sm:$0xff] }
  0x37   :  { %254 = vmatpush.msrb.mxu0 %v86_v4  ;;  %334 = vperm.xlu1 %448, %v304_v36  }
  0x39   :  { %255 = vmatpush.msrb.mxu0 %v85_v5 }
  0x3b   :  { %256 = vmatpush.msrb.mxu0 %v84_v6 }
  0x3c   :  { %339 = vperm.xlu2 %449, %v305_v46  }
  0x3d   :  { %257 = vmatpush.msrb.mxu0 %v83_v7 }
  0x3e   :  { %113 = vmatmul.f32.gmra.mxu0 %v73_v18  ;;  %344 = vperm.xlu0 %447, %v306_v33  }
  0x3f   :  { %258 = vmatpush.msrb.mxu0 %v82_v8 }
  0x41   :  { %259 = vmatpush.msrb.mxu0 %v81_v9 }
  0x43   :  { %260 = vmatpush.msrb.mxu0 %v80_v10 }
  0x45   :  { %261 = vmatpush.msrb.mxu0 %v79_v11 }
  0x46   :  { %116 = vmatmul.f32.gmra.mxu0 %v74_v19 }
  0x47   :  { %262 = vmatpush.msrb.mxu0 %v78_v12 }
  0x49   :  { %263 = vmatpush.msrb.mxu0 %v77_v13 }
  0x4b   :  { %264 = vmatpush.msrb.mxu0 %v76_v14 }
  0x4d   :  { %265 = vmatpush.msrb.mxu0 %v75_v15 }
  0x76   :  { %v164_v5 = vpop.permute.xlu2 %163 }
  0x7e   :  { %v169_v9 = vpop.permute.xlu2 %168 }
  0x86   :  { %v310_v33 = vpop.permute.xlu2 %309 }
  0x88   :  { %v154_v49 = vpop.permute.xlu1 %153  ;;  %v144_v55 = vpop.permute.xlu0 %143 }
  0x8e   :  { %v325_v42 = vpop.permute.xlu2 %324 }
  0x90   :  { %v159_v50 = vpop.permute.xlu1 %158  ;;  %v149_v59 = vpop.permute.xlu0 %148 }
  0x98   :  { %v139_v51 = vpop.permute.xlu1 %138  ;;  %v174_v13 = vpop.permute.xlu0 %173 }
  0xa0   :  { %v315_v36 = vpop.permute.xlu0 %314 }
  0xab   :  { %v108_v23 = vpop.f32.mrf.mxu0 }
  0xb3   :  { %v111_v26 = vpop.f32.mrf.mxu0 }
  0xbb   :  { %v114_v29 = vpop.f32.mrf.mxu0 }
  0xc3   :  { %v117_v32 = vpop.f32.mrf.mxu0 }
  0xc4   :  { %209 = vmatpush.msra.mxu1 %v117_v32  ;;  %v298_v32 = vld [vmem:[#allocation7 + $0x38] sm:$0xff] }
  0xc6   :  { %210 = vmatpush.msra.mxu1 %v114_v29  ;;  %v295_v29 = vld [vmem:[#allocation7 + $0x20] sm:$0xff] }
  0xc8   :  { %211 = vmatpush.msra.mxu1 %v111_v26  ;;  %v292_v26 = vld [vmem:[#allocation7 + $0x8] sm:$0xff] }
  0xca   :  { %212 = vmatpush.msra.mxu1 %v108_v23 }
  0xcc   :  { %213 = vmatpush.msra.mxu1 %v74_v19 }
  0xce   :  { %214 = vmatpush.msra.mxu1 %v73_v18 }
  0xd0   :  { %215 = vmatpush.msra.mxu1 %v72_v17 }
  0xd2   :  { %216 = vmatpush.msra.mxu1 %v660_v16 }
  0xd3   :  { %416 = vmatmul.msk.f32.vlgmr.msra.gmra.mxu1 %vm176_vm0, %v120_v35 }
  0xdb   :  { %417 = vmatmul.msk.f32.gmra.mxu1 %vm176_vm0, %v121_v37 }
  0xe3   :  { %418 = vmatmul.msk.f32.gmra.mxu1 %vm176_vm0, %v122_v39  ;;  %v320_v39 = vpop.permute.xlu1 %319 }
  0xeb   :  { %419 = vmatmul.msk.f32.gmra.mxu1 %vm176_vm0, %v123_v41 }
  0xf3   :  { %420 = vmatmul.msk.f32.gmra.mxu1 %vm176_vm0, %v124_v43 }
  0xfb   :  { %421 = vmatmul.msk.f32.gmra.mxu1 %vm176_vm0, %v125_v45  ;;  %v330_v45 = vpop.permute.xlu0 %329 }
 0x103   :  { %422 = vmatmul.msk.f32.gmra.mxu1 %vm176_vm0, %v126_v47 }
 0x10b   :  { %423 = vmatmul.msk.f32.gmra.mxu1 %vm176_vm0, %v127_v48  ;;  %v335_v48 = vpop.permute.xlu1 %334 }
 0x150   :  { %v218_v52 = vpop.f32.mrf.mxu1 }
 0x151   :  { %v219_v53 = vadd.f32 %v218_v52, %v139_v51  ;;  %v340_v51 = vpop.permute.xlu2 %339 }
 0x153   :  { %v242_v54 = vmax.f32 %v219_v53, 0.0 }
 0x155   :  { %266 = vmatmul.f32.vlgmr.msrb.gmra.mxu0 %v242_v54 }
 0x158   :  { %v221_v56 = vpop.f32.mrf.mxu1 }
 0x159   :  { %v222_v57 = vadd.f32 %v221_v56, %v144_v55 }
 0x15b   :  { %v243_v58 = vmax.f32 %v222_v57, 0.0 }
 0x15d   :  { %269 = vmatmul.f32.vlgmr.msra.gmra.mxu2 %v243_v58 }
 0x160   :  { %v224_v60 = vpop.f32.mrf.mxu1 }
 0x161   :  { %v225_v61 = vadd.f32 %v224_v60, %v149_v59 }
 0x163   :  { %v244_v62 = vmax.f32 %v225_v61, 0.0 }
 0x165   :  { %272 = vmatmul.f32.gmra.mxu2 %v244_v62 }
 0x168   :  { %v227_v63 = vpop.f32.mrf.mxu1 }
 0x169   :  { %v228_v0 = vadd.f32 %v227_v63, %v154_v49 }
 0x16b   :  { %v245_v1 = vmax.f32 %v228_v0, 0.0 }
 0x16d   :  { %275 = vmatmul.f32.gmra.mxu2 %v245_v1 }
 0x170   :  { %v230_v2 = vpop.f32.mrf.mxu1 }
 0x171   :  { %v231_v3 = vadd.f32 %v230_v2, %v159_v50 }
 0x173   :  { %v246_v4 = vmax.f32 %v231_v3, 0.0 }
 0x175   :  { %278 = vmatmul.f32.gmra.mxu2 %v246_v4 }
 0x178   :  { %v233_v6 = vpop.f32.mrf.mxu1 }
 0x179   :  { %v234_v7 = vadd.f32 %v233_v6, %v164_v5 }
 0x17b   :  { %v247_v8 = vmax.f32 %v234_v7, 0.0 }
 0x17d   :  { %281 = vmatmul.f32.gmra.mxu2 %v247_v8 }
 0x180   :  { %v236_v10 = vpop.f32.mrf.mxu1 }
 0x181   :  { %v237_v11 = vadd.f32 %v236_v10, %v169_v9 }
 0x183   :  { %v248_v12 = vmax.f32 %v237_v11, 0.0 }
 0x185   :  { %284 = vmatmul.f32.gmra.mxu2 %v248_v12 }
 0x188   :  { %v239_v14 = vpop.f32.mrf.mxu1 }
 0x189   :  { %v240_v15 = vadd.f32 %v239_v14, %v174_v13 }
 0x18b   :  { %v249_v16 = vmax.f32 %v240_v15, 0.0 }
 0x18d   :  { %287 = vmatmul.f32.gmra.mxu2 %v249_v16 }
 0x1d2   :  { %v267_v24 = vpop.f32.mrf.mxu0 }
 0x1e0   :  { %v270_v17 = vpop.f32.mrf.mxu2 }
 0x1e8   :  { %v273_v18 = vpop.f32.mrf.mxu2 }
 0x1f0   :  { %v276_v19 = vpop.f32.mrf.mxu2 }
 0x1f8   :  { %v279_v20 = vpop.f32.mrf.mxu2 }
 0x200   :  { %v282_v21 = vpop.f32.mrf.mxu2 }
 0x208   :  { %v285_v22 = vpop.f32.mrf.mxu2 }
 0x210   :  { %v288_v23 = vpop.f32.mrf.mxu2 }
 0x211   :  { %347 = vmatpush.msra.mxu3 %v288_v23 }
 0x213   :  { %348 = vmatpush.msra.mxu3 %v285_v22 }
 0x215   :  { %349 = vmatpush.msra.mxu3 %v282_v21 }
 0x217   :  { %350 = vmatpush.msra.mxu3 %v279_v20 }
 0x219   :  { %351 = vmatpush.msra.mxu3 %v276_v19 }
 0x21b   :  { %352 = vmatpush.msra.mxu3 %v273_v18 }
 0x21d   :  { %353 = vmatpush.msra.mxu3 %v270_v17 }
 0x21f   :  { %354 = vmatpush.msra.mxu3 %v267_v24 }
 0x221   :  { %355 = vmatpush.msra.mxu3 %v249_v16 }
 0x223   :  { %356 = vmatpush.msra.mxu3 %v248_v12 }
 0x225   :  { %357 = vmatpush.msra.mxu3 %v247_v8 }
 0x227   :  { %358 = vmatpush.msra.mxu3 %v246_v4 }
 0x229   :  { %359 = vmatpush.msra.mxu3 %v245_v1 }
 0x22b   :  { %360 = vmatpush.msra.mxu3 %v244_v62 }
 0x22d   :  { %361 = vmatpush.msra.mxu3 %v243_v58 }
 0x22f   :  { %362 = vmatpush.msra.mxu3 %v242_v54  ;;  %v345_v54 = vpop.permute.xlu0 %344 }
 0x230   :  { %363 = vmatmul.f32.vlgmr.msra.gmra.mxu3 %v291_v25 }
 0x238   :  { %366 = vmatmul.f32.gmra.mxu3 %v292_v26 }
 0x240   :  { %369 = vmatmul.f32.gmra.mxu3 %v293_v27 }
 0x248   :  { %372 = vmatmul.f32.gmra.mxu3 %v294_v28 }
 0x250   :  { %375 = vmatmul.f32.gmra.mxu3 %v295_v29 }
 0x258   :  { %378 = vmatmul.f32.gmra.mxu3 %v296_v30 }
 0x260   :  { %381 = vmatmul.f32.gmra.mxu3 %v297_v31 }
 0x268   :  { %384 = vmatmul.f32.gmra.mxu3 %v298_v32 }
 0x2b3   :  { %v364_v34 = vpop.f32.mrf.mxu3 }
 0x2b4   :  { %v365_v35 = vadd.f32 %v364_v34, %v310_v33 }
 0x2b6   :  { %388 = vst [vmem:[#allocation8] sm:$0xff] %v365_v35 }
 0x2bb   :  { %v367_v37 = vpop.f32.mrf.mxu3 }
 0x2bc   :  { %v368_v38 = vadd.f32 %v367_v37, %v315_v36 }
 0x2be   :  { %389 = vst [vmem:[#allocation8 + $0x8] sm:$0xff] %v368_v38 }
 0x2c3   :  { %v370_v40 = vpop.f32.mrf.mxu3 }
 0x2c4   :  { %v371_v41 = vadd.f32 %v370_v40, %v320_v39 }
 0x2c6   :  { %390 = vst [vmem:[#allocation8 + $0x10] sm:$0xff] %v371_v41 }
 0x2cb   :  { %v373_v43 = vpop.f32.mrf.mxu3 }
 0x2cc   :  { %v374_v44 = vadd.f32 %v373_v43, %v325_v42 }
 0x2ce   :  { %391 = vst [vmem:[#allocation8 + $0x18] sm:$0xff] %v374_v44 }
 0x2d3   :  { %v376_v46 = vpop.f32.mrf.mxu3 }
 0x2d4   :  { %v377_v47 = vadd.f32 %v376_v46, %v330_v45 }
 0x2d6   :  { %392 = vst [vmem:[#allocation8 + $0x20] sm:$0xff] %v377_v47 }
 0x2db   :  { %v379_v49 = vpop.f32.mrf.mxu3 }
 0x2dc   :  { %v380_v50 = vadd.f32 %v379_v49, %v335_v48 }
 0x2de   :  { %393 = vst [vmem:[#allocation8 + $0x28] sm:$0xff] %v380_v50 }
 0x2e3   :  { %v382_v52 = vpop.f32.mrf.mxu3 }
 0x2e4   :  { %v383_v53 = vadd.f32 %v382_v52, %v340_v51 }
 0x2e6   :  { %394 = vst [vmem:[#allocation8 + $0x30] sm:$0xff] %v383_v53 }
 0x2eb   :  { %v385_v55 = vpop.f32.mrf.mxu3 }
 0x2ec   :  { %v386_v56 = vadd.f32 %v385_v55, %v345_v54 }
 0x2ee   :  { %395 = vst [vmem:[#allocation8 + $0x38] sm:$0xff] %v386_v56 }
 0x2ef   :  { %408 = dma.vmem_to_hbm [thread:$0]  %s401_s22, 1024, %s403_s25, [#allocation4], %s553_s29, %s553_s29, %s554_s30  }
 0x2f0   :  { %550 = dma.done.wait [#allocation4], 1024  }
 0x2f1   :  { %551 = vsyncadd [#allocation4], 4294966272 }
 0x2f2   :  { %413 = vsyncpa [#allocation3], 1 }
 0x2f3   :  { %414 = vsyncpa [#allocation6], 1 }
 0x2f4   :  { %415 = vsyncpa [#allocation4], 1 }

</bundles_post_ra>
